<compile_context>
chip_gen: v7x
topology: tpu7x:2x2x1
jax: 0.10.0
libtpu: 0.0.40
codegen_flags: <defaults>
</compile_context>

<pallas_src>
import functools

import jax
import jax.numpy as jnp
from jax.experimental import pallas as pl
from jax.experimental.pallas import tpu as pltpu

LANE = 128            # lane width: pad last dims to multiples of this
SUBLANE = 8           # sublane width: pad second-to-last dims to multiples of this
DEFAULT_TILE_B = 256  # batch rows per grid step (multiple of 256 fills the
                      # v6e/v7x MXU; tiny VMEM footprint on every generation)


def _round_up(x: int, m: int) -> int:
    return (x + m - 1) // m * m


# -----------------------------------------------------------------------------
# Kernel: one batch tile of  relu(x @ W1) @ W2   (biases pre-folded into W1/W2).
# -----------------------------------------------------------------------------
def dqn_kernel(x_ref, w1_ref, w2_ref, o_ref):
    x = x_ref[...]                                       # [TILE_B, IN_PAD]
    h = jnp.dot(x, w1_ref[...],
                preferred_element_type=jnp.float32)      # MXU -> [TILE_B, H_PAD]
    h = jnp.maximum(h, 0.0)                              # ReLU (VPU)
    y = jnp.dot(h, w2_ref[...],
                preferred_element_type=jnp.float32)      # MXU -> [TILE_B, OUT_PAD]
    o_ref[...] = y.astype(o_ref.dtype)                   # lane-dense store


# -----------------------------------------------------------------------------
# One-time parameter packing (kept out of the hot path).
# -----------------------------------------------------------------------------
def pack_dqn_params(w1, b1, w2, b2):
    """Fold biases into lane-padded weight matrices.

    Inputs (PyTorch W stored transposed, i.e. [in_features, out_features]):
      w1: [In, H], b1: [H], w2: [H, Out], b2: [Out]
    Returns:
      w1p: [IN_PAD, H_PAD]  -- b1 in row In; W1p[In, H] = 1.0 is a bias-carry
                               entry (relu(1) = 1 keeps the carry alive),
      w2p: [H_PAD, OUT_PAD] -- b2 in row H.
    Matching input layout: x_pad[:, :In] = x, x_pad[:, In] = 1.0, rest zero.
    """
    In, H = w1.shape
    Out = w2.shape[1]
    in_pad = _round_up(In + 1, LANE)
    h_pad = _round_up(H + 1, LANE)
    out_pad = _round_up(Out, LANE)

    w1p = jnp.zeros((in_pad, h_pad), jnp.float32)
    w1p = w1p.at[:In, :H].set(w1.astype(jnp.float32))
    w1p = w1p.at[In, :H].set(b1.astype(jnp.float32))   # layer-1 bias
    w1p = w1p.at[In, H].set(1.0)                       # carry 1.0 through ReLU

    w2p = jnp.zeros((h_pad, out_pad), jnp.float32)
    w2p = w2p.at[:H, :Out].set(w2.astype(jnp.float32))
    w2p = w2p.at[H, :Out].set(b2.astype(jnp.float32))  # layer-2 bias
    return w1p, w2p


def init_dqn_params(key, input_size, hidden_size, output_size):
    """Deterministic init mimicking nn.Linear's U(-1/sqrt(fan_in), 1/sqrt(fan_in))."""
    k1, k2, k3, k4 = jax.random.split(key, 4)
    bound1 = 1.0 / float(input_size) ** 0.5
    bound2 = 1.0 / float(hidden_size) ** 0.5
    w1 = jax.random.uniform(k1, (input_size, hidden_size), jnp.float32,
                            minval=-bound1, maxval=bound1)
    b1 = jax.random.uniform(k2, (hidden_size,), jnp.float32,
                            minval=-bound1, maxval=bound1)
    w2 = jax.random.uniform(k3, (hidden_size, output_size), jnp.float32,
                            minval=-bound2, maxval=bound2)
    b2 = jax.random.uniform(k4, (output_size,), jnp.float32,
                            minval=-bound2, maxval=bound2)
    return w1, b1, w2, b2


# -----------------------------------------------------------------------------
# Forward wrapper: pads x to lane-dense tiles, grids over the batch, then
# slices the meaningful output columns/rows back out (all cheap XLA ops).
# -----------------------------------------------------------------------------
@functools.partial(jax.jit, static_argnames=("output_size", "tile_b"))
def dqn_forward(x, w1p, w2p, *, output_size, tile_b=DEFAULT_TILE_B):
    B, In = x.shape
    in_pad, h_pad = w1p.shape
    out_pad = w2p.shape[1]

    # Batch tiling: fall back to a tiny (8-row) tile for very small batches.
    tile_b = min(tile_b, _round_up(B, SUBLANE))
    b_pad = _round_up(B, tile_b)

    # Lane-dense input with the bias ("ones") column at index In.
    x_pad = jnp.zeros((b_pad, in_pad), jnp.float32)
    x_pad = x_pad.at[:B, :In].set(x.astype(jnp.float32))
    x_pad = x_pad.at[:, In].set(1.0)

    grid = (b_pad // tile_b,)
    out = pl.pallas_call(
        dqn_kernel,
        grid=grid,
        out_shape=jax.ShapeDtypeStruct((b_pad, out_pad), jnp.float32),
        in_specs=[
            # Activations: one (tile_b, in_pad) block per grid step.
            pl.BlockSpec((tile_b, in_pad), lambda i: (i, 0),
                         memory_space=pltpu.MemorySpace.VMEM),
            # Weights: same block every step -> stay VMEM-resident.
            pl.BlockSpec((in_pad, h_pad), lambda i: (0, 0),
                         memory_space=pltpu.MemorySpace.VMEM),
            pl.BlockSpec((h_pad, out_pad), lambda i: (0, 0),
                         memory_space=pltpu.MemorySpace.VMEM),
        ],
        out_specs=pl.BlockSpec((tile_b, out_pad), lambda i: (i, 0),
                               memory_space=pltpu.MemorySpace.VMEM),
        compiler_params=pltpu.CompilerParams(
            dimension_semantics=("parallel",),  # split batch tiles across TCs (2x on v7x)
        ),
    )(x_pad, w1p, w2p)

    return out[:B, :output_size]


if __name__ == "__main__":
    # Snake-game DQN sizes: 11-feature state vector, hidden=32, 3 actions.
    input_size, hidden_size, output_size = 11, 32, 3

    key = jax.random.PRNGKey(0)
    kx_small, kx_big, kparam = jax.random.split(key, 3)

    w1, b1, w2, b2 = init_dqn_params(kparam, input_size, hidden_size, output_size)
    w1p, w2p = pack_dqn_params(w1, b1, w2, b2)  # one-time packing

    def ref_forward(x):  # plain-JAX reference with the PyTorch module's semantics
        return jnp.maximum(x @ w1 + b1[None, :], 0.0) @ w2 + b2[None, :]

    # TPU default matmul precision routes f32 operands through bf16 MXU passes;
    # since the biases are folded through the MXU (1.0 * b terms) while the
    # reference adds them exactly in f32, allow O(1e-3) deviation.
    TOL = dict(atol=5e-3, rtol=5e-3)

    # (1) Small module-scale batch (batch=2), as in the original test.
    x_small = jax.random.normal(kx_small, (2, input_size), jnp.float32)
    out_small = jax.block_until_ready(
        dqn_forward(x_small, w1p, w2p, output_size=output_size))
    assert out_small.shape == (2, output_size)
    assert jnp.allclose(out_small, ref_forward(x_small), **TOL)

    # (2) Replay-buffer-sized batch: the case the gridded kernel is built for
    #     (256-row MXU tiles, VMEM-resident weights, 'parallel' batch axis).
    x_big = jax.random.normal(kx_big, (1024, input_size), jnp.float32)
    out_big = jax.block_until_ready(
        dqn_forward(x_big, w1p, w2p, output_size=output_size))
    assert out_big.shape == (1024, output_size)
    assert jnp.allclose(out_big, ref_forward(x_big), **TOL)

    print("KERNEL_OK")
</pallas_src>

<mosaic_0001>
module attributes {stable_mosaic.version = 11 : i64} {
  func.func @dqn_kernel(%arg0: i32, %arg1: memref<8x128xf32, #tpu.memory_space<vmem>>, %arg2: memref<128x128xf32, #tpu.memory_space<vmem>>, %arg3: memref<128x128xf32, #tpu.memory_space<vmem>>, %arg4: memref<8x128xf32, #tpu.memory_space<vmem>>) attributes {dimension_semantics = [#tpu.dimension_semantics<parallel>], iteration_bounds = array<i64: 1>, scalar_prefetch = 0 : i64, scratch_operands = 0 : i64, tpu.core_type = #tpu.core_type<tc>, window_params = [{transform_indices = @transform_0, window_bounds = array<i64: 8, 128>}, {pipeline_mode = #tpu.pipeline_mode<synchronous>, transform_indices = @transform_1, window_bounds = array<i64: 128, 128>}, {pipeline_mode = #tpu.pipeline_mode<synchronous>, transform_indices = @transform_2, window_bounds = array<i64: 128, 128>}, {transform_indices = @transform_3, window_bounds = array<i64: 8, 128>}]} {
    %c0 = arith.constant 0 : index
    %c0_0 = arith.constant 0 : index
    %0 = vector.load %arg1[%c0, %c0_0] : memref<8x128xf32, #tpu.memory_space<vmem>>, vector<8x128xf32>
    %c0_1 = arith.constant 0 : index
    %c0_2 = arith.constant 0 : index
    %1 = vector.load %arg2[%c0_1, %c0_2] : memref<128x128xf32, #tpu.memory_space<vmem>>, vector<128x128xf32>
    %cst = arith.constant dense<0.000000e+00> : vector<8x128xf32>
    %2 = tpu.matmul %0, %1, %cst {dimension_numbers = #tpu.dot_dimension_numbers<[1], [0], [0], [1], [0, 0, 1, 1], [], []>} : vector<8x128xf32>, vector<128x128xf32>, vector<8x128xf32> -> vector<8x128xf32>
    %cst_3 = arith.constant 0.000000e+00 : f32
    %3 = vector.broadcast %cst_3 : f32 to vector<8x128xf32>
    %4 = arith.maximumf %2, %3 : vector<8x128xf32>
    %c0_4 = arith.constant 0 : index
    %c0_5 = arith.constant 0 : index
    %5 = vector.load %arg3[%c0_4, %c0_5] : memref<128x128xf32, #tpu.memory_space<vmem>>, vector<128x128xf32>
    %cst_6 = arith.constant dense<0.000000e+00> : vector<8x128xf32>
    %6 = tpu.matmul %4, %5, %cst_6 {dimension_numbers = #tpu.dot_dimension_numbers<[1], [0], [0], [1], [0, 0, 1, 1], [], []>} : vector<8x128xf32>, vector<128x128xf32>, vector<8x128xf32> -> vector<8x128xf32>
    %c0_7 = arith.constant 0 : index
    %c0_8 = arith.constant 0 : index
    %7 = vector.load %arg4[%c0_7, %c0_8] : memref<8x128xf32, #tpu.memory_space<vmem>>, vector<8x128xf32>
    tpu.vector_store %arg4[%c0_7, %c0_8], %6 {strides = array<i32>} : memref<8x128xf32, #tpu.memory_space<vmem>>, vector<8x128xf32>,
    return
  }
  func.func @transform_0(%arg0: i32) -> (i32, i32) {
    %c0_i32 = arith.constant 0 : i32
    %c0_i32_0 = arith.constant 0 : i32
    return %arg0, %c0_i32 : i32, i32
  }
  func.func @transform_1(%arg0: i32) -> (i32, i32) {
    %c0_i32 = arith.constant 0 : i32
    %c0_i32_0 = arith.constant 0 : i32
    %c0_i32_1 = arith.constant 0 : i32
    return %c0_i32, %c0_i32_0 : i32, i32
  }
  func.func @transform_2(%arg0: i32) -> (i32, i32) {
    %c0_i32 = arith.constant 0 : i32
    %c0_i32_0 = arith.constant 0 : i32
    %c0_i32_1 = arith.constant 0 : i32
    return %c0_i32, %c0_i32_0 : i32, i32
  }
  func.func @transform_3(%arg0: i32) -> (i32, i32) {
    %c0_i32 = arith.constant 0 : i32
    %c0_i32_0 = arith.constant 0 : i32
    return %arg0, %c0_i32 : i32, i32
  }
}

</mosaic_0001>

<bundles_post_ra>
// kernel: dqn_forward.1
= control target key start
LH: loop header
LB: loop body
LE: loop exit
PB: predicated region body
PF: predicated region fallthrough
CT: control target
= control target key end

     0   :  { %8 = vsyncpa [#allocation3], 0  ;;  %s503_s0 = inlined_call_operand.vmem [shape: f32[8,128], index: 0, kind: input, shape index: {}]   ;;  %s504_s1 = inlined_call_operand.hbm [shape: f32[128,128], index: 1, kind: input, shape index: {}]   ;;  %s505_s2 = inlined_call_operand.hbm [shape: f32[128,128], index: 2, kind: input, shape index: {}]   ;;  %s506_s3 = inlined_call_operand.vmem [shape: f32[8,128], index: 3, kind: output, shape index: {}]  }
   0x1   :  { %9 = vsyncpa [#allocation5], 0  ;;  %s430_s12 = smov [#allocation2]   ;;  %s382_s16 = scalar_lea.hbm %s504_s1, 2048 }
   0x2   :  { %s17_s13 = sshll.u32 %s430_s12, 4  ;;  %p383_p0 = scmp.ne.s32.totalorder %s504_s1, %s382_s16  ;;  %s18_s13 = int_to_ptr.vmem [resolvable:$true] %s17_s13 }
   0x3   :  { %p386_p1 = scmp.lt.u32.totalorder %s382_s16, %s504_s1 }
   0x5   :  { %p388_p2 = pnand %p386_p1, %p383_p0 }
   0x7   :  { %391 = shalt.err (!%p388_p2)
}
   0x8   :  { %s392_s21 = scalar_lea.vmem %s18_s13, 2048  ;;  %p397_p4 = scmp.lt.s32.totalorder %s18_s13, %s18_s13 }
   0x9   :  { %p393_p3 = scmp.ne.s32.totalorder %s18_s13, %s392_s21  ;;  %p398_p5 = scmp.lt.s32.totalorder %s392_s21, %s392_s21 }
   0xb   :  { %p399_p6 = por %p398_p5, %p397_p4 }
   0xd   :  { %p400_p7 = pnand %p399_p6, %p393_p3 }
   0xf   :  { %403 = shalt.err (!%p400_p7)
}
  0x10   :  { %s431_s22 = smov 128   ;;  %s432_s23 = smov 8  }
  0x11   :  { %23 = dma.hbm_to_vmem [thread:$0]  %s504_s1, 2048, %s18_s13, [#allocation3], %s431_s22, %s431_s22, %s432_s23  }
  0x12   :  { %s433_s26 = smov [#allocation4]   ;;  %s404_s30 = scalar_lea.hbm %s505_s2, 2048 }
  0x13   :  { %s29_s27 = sshll.u32 %s433_s26, 4  ;;  %p405_p8 = scmp.ne.s32.totalorder %s505_s2, %s404_s30  ;;  %s30_s27 = int_to_ptr.vmem [resolvable:$true] %s29_s27 }
  0x14   :  { %p408_p9 = scmp.lt.u32.totalorder %s404_s30, %s505_s2 }
  0x16   :  { %p410_p10 = pnand %p408_p9, %p405_p8 }
  0x18   :  { %413 = shalt.err (!%p410_p10)
}
  0x19   :  { %s414_s8 = scalar_lea.vmem %s30_s27, 2048  ;;  %p419_p12 = scmp.lt.s32.totalorder %s30_s27, %s30_s27 }
  0x1a   :  { %p415_p11 = scmp.ne.s32.totalorder %s30_s27, %s414_s8  ;;  %p420_p13 = scmp.lt.s32.totalorder %s414_s8, %s414_s8 }
  0x1c   :  { %p421_p0 = por %p420_p13, %p419_p12 }
  0x1e   :  { %p422_p1 = pnand %p421_p0, %p415_p11 }
  0x20   :  { %425 = shalt.err (!%p422_p1)
}
  0x21   :  { %35 = dma.hbm_to_vmem [thread:$0]  %s505_s2, 2048, %s30_s27, [#allocation5], %s431_s22, %s431_s22, %s432_s23  }
  0x22   :  { %426 = dma.done.wait [#allocation3], 2048  }
  0x23   :  { %427 = vsyncadd [#allocation3], 4294965248 }
  0x24   :  { %428 = dma.done.wait [#allocation5], 2048  }
  0x25   :  { %429 = vsyncadd [#allocation5], 4294965248  ;;  %v434_v0 = vmov 0.0|0.0   ;;  %vm435_vm0 = vmmov 0   ;;  %v436_v1 = vmov 0.0   ;;  %v43_v2 = vld [vmem:[#allocation2] sm:$0xff] }
  0x26   :  { %327 = vmatprep.subr.bf16.mxu0 %v434_v0  ;;  %289 = vmatprep.mubr.msk.f32.mxu0 %vm435_vm0, %v436_v1  ;;  %v44_v3 = vld [vmem:[#allocation2 + $0x8] sm:$0xff]  ;;  %v45_v4 = vld [vmem:[#allocation2 + $0x10] sm:$0xff]  ;;  %v46_v6 = vld [vmem:[#allocation2 + $0x18] sm:$0xff] }
  0x27   :  { %351 = vmatprep.subr.bf16.mxu1 %v434_v0  ;;  %324 = vmatprep.mubr.msk.f32.mxu1 %vm435_vm0, %v436_v1  ;;  %v328_v5 = vpack.c.bf16 %v44_v3, %v43_v2  ;;  %v331_v7 = vpack.c.bf16 %v46_v6, %v45_v4  ;;  %v47_v8 = vld [vmem:[#allocation2 + $0x20] sm:$0xff]  ;;  %v48_v9 = vld [vmem:[#allocation2 + $0x28] sm:$0xff]  ;;  %v132_v12 = vld [vmem:[#allocation4 + $0x10] sm:$0xff] }
  0x28   :  { %v130_v10 = vld [vmem:[#allocation4] sm:$0xff]  ;;  %v131_v11 = vld [vmem:[#allocation4 + $0x8] sm:$0xff]  ;;  %v133_v13 = vld [vmem:[#allocation4 + $0x18] sm:$0xff]  ;;  %v334_v14 = vpack.c.bf16 %v48_v9, %v47_v8 }
  0x29   :  { %329 = vmatpush3.bf16.msra.mxu0 %v328_v5  ;;  %v352_v15 = vpack.c.bf16 %v131_v11, %v130_v10  ;;  %v49_v16 = vld [vmem:[#allocation2 + $0x30] sm:$0xff]  ;;  %v50_v17 = vld [vmem:[#allocation2 + $0x38] sm:$0xff]  ;;  %v355_v18 = vpack.c.bf16 %v133_v13, %v132_v12  ;;  %v134_v19 = vld [vmem:[#allocation4 + $0x20] sm:$0xff] }
  0x2a   :  { %330 = vmatprep.subr.bf16.mxu0 %v434_v0  ;;  %v135_v20 = vld [vmem:[#allocation4 + $0x28] sm:$0xff]  ;;  %v337_v21 = vpack.c.bf16 %v50_v17, %v49_v16  ;;  %v51_v22 = vld [vmem:[#allocation2 + $0x40] sm:$0xff]  ;;  %v136_v25 = vld [vmem:[#allocation4 + $0x30] sm:$0xff] }
  0x2b   :  { %353 = vmatpush3.bf16.msra.mxu1 %v352_v15  ;;  %v52_v23 = vld [vmem:[#allocation2 + $0x48] sm:$0xff]  ;;  %v358_v24 = vpack.c.bf16 %v135_v20, %v134_v19  ;;  %v137_v26 = vld [vmem:[#allocation4 + $0x38] sm:$0xff]  ;;  %v53_v28 = vld [vmem:[#allocation2 + $0x50] sm:$0xff] }
  0x2c   :  { %354 = vmatprep.subr.bf16.mxu1 %v434_v0  ;;  %v340_v27 = vpack.c.bf16 %v52_v23, %v51_v22  ;;  %v54_v29 = vld [vmem:[#allocation2 + $0x58] sm:$0xff]  ;;  %v361_v30 = vpack.c.bf16 %v137_v26, %v136_v25  ;;  %v138_v31 = vld [vmem:[#allocation4 + $0x40] sm:$0xff]  ;;  %v139_v32 = vld [vmem:[#allocation4 + $0x48] sm:$0xff] }
  0x2d   :  { %332 = vmatpush3.bf16.msra.mxu0 %v331_v7  ;;  %v343_v33 = vpack.c.bf16 %v54_v29, %v53_v28  ;;  %v55_v34 = vld [vmem:[#allocation2 + $0x60] sm:$0xff]  ;;  %v56_v35 = vld [vmem:[#allocation2 + $0x68] sm:$0xff]  ;;  %v364_v36 = vpack.c.bf16 %v139_v32, %v138_v31  ;;  %v140_v37 = vld [vmem:[#allocation4 + $0x50] sm:$0xff] }
  0x2e   :  { %333 = vmatprep.subr.bf16.mxu0 %v434_v0  ;;  %v141_v38 = vld [vmem:[#allocation4 + $0x58] sm:$0xff]  ;;  %v346_v39 = vpack.c.bf16 %v56_v35, %v55_v34  ;;  %v57_v40 = vld [vmem:[#allocation2 + $0x70] sm:$0xff]  ;;  %v142_v43 = vld [vmem:[#allocation4 + $0x60] sm:$0xff] }
  0x2f   :  { %356 = vmatpush3.bf16.msra.mxu1 %v355_v18  ;;  %v58_v41 = vld [vmem:[#allocation2 + $0x78] sm:$0xff]  ;;  %v367_v42 = vpack.c.bf16 %v141_v38, %v140_v37  ;;  %v143_v44 = vld [vmem:[#allocation4 + $0x68] sm:$0xff]  ;;  %v42_v47 = vld [vmem:[%s503_s0] sm:$0xff] }
  0x30   :  { %357 = vmatprep.subr.bf16.mxu1 %v434_v0  ;;  %v349_v45 = vpack.c.bf16 %v58_v41, %v57_v40  ;;  %v370_v46 = vpack.c.bf16 %v143_v44, %v142_v43  ;;  %v144_v48 = vld [vmem:[#allocation4 + $0x70] sm:$0xff]  ;;  %v145_v49 = vld [vmem:[#allocation4 + $0x78] sm:$0xff] }
  0x31   :  { %335 = vmatpush3.bf16.msra.mxu0 %v334_v14  ;;  %v373_v50 = vpack.c.bf16 %v145_v49, %v144_v48 }
  0x32   :  { %336 = vmatprep.subr.bf16.mxu0 %v434_v0 }
  0x33   :  { %359 = vmatpush3.bf16.msra.mxu1 %v358_v24 }
  0x34   :  { %360 = vmatprep.subr.bf16.mxu1 %v434_v0 }
  0x35   :  { %338 = vmatpush3.bf16.msra.mxu0 %v337_v21 }
  0x36   :  { %339 = vmatprep.subr.bf16.mxu0 %v434_v0 }
  0x37   :  { %362 = vmatpush3.bf16.msra.mxu1 %v361_v30 }
  0x38   :  { %363 = vmatprep.subr.bf16.mxu1 %v434_v0 }
  0x39   :  { %341 = vmatpush3.bf16.msra.mxu0 %v340_v27 }
  0x3a   :  { %342 = vmatprep.subr.bf16.mxu0 %v434_v0 }
  0x3b   :  { %365 = vmatpush3.bf16.msra.mxu1 %v364_v36 }
  0x3c   :  { %366 = vmatprep.subr.bf16.mxu1 %v434_v0 }
  0x3d   :  { %344 = vmatpush3.bf16.msra.mxu0 %v343_v33 }
  0x3e   :  { %345 = vmatprep.subr.bf16.mxu0 %v434_v0 }
  0x3f   :  { %368 = vmatpush3.bf16.msra.mxu1 %v367_v42 }
  0x40   :  { %369 = vmatprep.subr.bf16.mxu1 %v434_v0 }
  0x41   :  { %347 = vmatpush3.bf16.msra.mxu0 %v346_v39 }
  0x42   :  { %348 = vmatprep.subr.bf16.mxu0 %v434_v0 }
  0x43   :  { %371 = vmatpush3.bf16.msra.mxu1 %v370_v46 }
  0x44   :  { %372 = vmatprep.subr.bf16.mxu1 %v434_v0 }
  0x45   :  { %350 = vmatpush3.bf16.msra.mxu0 %v349_v45 }
  0x47   :  { %374 = vmatpush3.bf16.msra.mxu1 %v373_v50 }
  0x48   :  { %290 = vmatmul.mubr.f32.vlgmr.msra.gmra.mrb[0].mxu0 %v42_v47 }
 0x11b   :  { %v125_v51 = vpop.f32.mrb[0].mxu0 }
 0x11c   :  { %v129_v52 = vmax.f32 %v125_v51, 0.0  ;;  %v291_v53 = vpop.f32.mrb[1].mxu0 }
 0x11e   :  { %325 = vmatmul.mubr.f32.vlgmr.msra.gmra.mrb[0].mxu1 %v129_v52 }
 0x1f1   :  { %v212_v54 = vpop.f32.mrb[0].mxu1 }
 0x1f2   :  { %216 = vst [vmem:[%s506_s3] sm:$0xff] %v212_v54  ;;  %v326_v55 = vpop.f32.mrb[1].mxu1 }
 0x1f3   :  { %221 = vsyncpa [#allocation3], 1 }
 0x1f4   :  { %222 = vsyncpa [#allocation5], 1 }

</bundles_post_ra>
